<compile_context>
chip_gen: v6e
topology: v6e:2x2x1
jax: 0.10.0
libtpu: 0.0.40
codegen_flags: <defaults>
</compile_context>

<pallas_src>
import numpy as np

import jax
import jax.numpy as jnp
from jax.experimental import pallas as pl
from jax.experimental.pallas import tpu as pltpu

_LANE = 128
_SUBLANE = 8


def _round_up(n, m):
    return ((n + m - 1) // m) * m


def _default_tile_bytes():
    """Per-generation tile byte budget (per buffer, before double-buffering)."""
    try:
        kind = jax.devices()[0].device_kind.lower()
    except Exception:
        kind = ""
    if ("v6" in kind) or ("v7" in kind) or ("7x" in kind):
        # 4 MiB tile -> in+out double-buffered = 16 MiB, fits the 32 MiB
        # default scoped VMEM on v6e / v7x.
        return 4 << 20
    # Safe everywhere (v5e default scoped VMEM is 16 MiB).
    return 2 << 20


def _choose_tiles(B, F, itemsize, target_bytes):
    """Pick (bs_tile, f_tile, n_b, n_f) so each grid step moves ~target_bytes.

    Legality: bs_tile is either == B or a multiple of 8; f_tile is either == F
    or a multiple of 128.  Ragged edges are handled by Pallas edge clamping.
    """
    per_sample = max(F * itemsize, 1)
    want_bs = max(1, target_bytes // per_sample)

    if want_bs >= B or B <= _SUBLANE:
        bs_tile = B
    else:
        n_b = pl.cdiv(B, want_bs)
        bs_tile = _round_up(pl.cdiv(B, n_b), _SUBLANE)

    # Split the feature axis so one (bs_tile, f_tile) tile is ~target_bytes,
    # with balanced chunks (compute n_f first, then round the tile up).
    tile_bytes = bs_tile * per_sample
    if tile_bytes <= target_bytes or F <= _LANE:
        f_tile = F
    else:
        n_f = max(1, min(pl.cdiv(tile_bytes, target_bytes), pl.cdiv(F, _LANE)))
        f_tile = _round_up(pl.cdiv(F, n_f), _LANE)
        if f_tile >= F:
            f_tile = F

    n_b = pl.cdiv(B, bs_tile)
    n_f = pl.cdiv(F, f_tile)

    # v7x has two TensorCores: make sure there are >=2 grid steps whenever
    # there is a meaningful amount of work to split.
    if n_b * n_f == 1 and B * F * itemsize > (256 << 10):
        if B >= 2 * _SUBLANE:
            bs_tile = _round_up(pl.cdiv(B, 2), _SUBLANE)
            n_b = pl.cdiv(B, bs_tile)
        elif F >= 2 * _LANE:
            f_tile = _round_up(pl.cdiv(F, 2), _LANE)
            n_f = pl.cdiv(F, f_tile)

    return bs_tile, f_tile, n_b, n_f


def _drop_path_kernel(scale_ref, x_ref, o_ref):
    # scale_ref: (bs_tile, 1) float32 in VMEM, per-sample scale (0 or 1/keep_prob).
    # x_ref / o_ref: (bs_tile, f_tile) tile of the flattened activation.
    o_ref[...] = (x_ref[...].astype(jnp.float32) * scale_ref[...]).astype(o_ref.dtype)


def drop_path(x, drop_prob=0.0, training=False, key=None, *, donate=False,
              tile_bytes=None):
    """Pallas DropPath.  x: (B, ...) with any trailing dims (e.g. NCHW).

    NOTE: callers must thread a fresh `key` every step; the key=None fallback
    is deterministic (same samples dropped every call).
    """
    if drop_prob == 0.0 or not training:
        return x
    if drop_prob >= 1.0:
        # keep_prob == 0 would give 0/0 = NaN in the PyTorch reference;
        # dropping everything is the only consistent finite output.
        return jnp.zeros_like(x)
    if key is None:
        key = jax.random.PRNGKey(0)

    keep_prob = 1.0 - float(drop_prob)
    B = x.shape[0]
    F = int(np.prod(x.shape[1:])) if x.ndim > 1 else 1
    itemsize = jnp.dtype(x.dtype).itemsize

    # Per-sample keep mask -> per-sample scale, standard JAX PRNG (independent
    # across samples; no stateful in-kernel PRNG needed).
    keep = jax.random.bernoulli(key, p=keep_prob, shape=(B,))
    scale = (keep.astype(jnp.float32) * jnp.float32(1.0 / keep_prob)).reshape(B, 1)

    x2 = x.reshape(B, F)  # contiguous reshape: no data movement

    target = int(tile_bytes) if tile_bytes is not None else _default_tile_bytes()
    bs_tile, f_tile, n_b, n_f = _choose_tiles(B, F, itemsize, target)

    out = pl.pallas_call(
        _drop_path_kernel,
        out_shape=jax.ShapeDtypeStruct((B, F), x.dtype),
        grid=(n_b, n_f),
        in_specs=[
            pl.BlockSpec((bs_tile, 1), lambda b, f: (b, 0)),        # scale
            pl.BlockSpec((bs_tile, f_tile), lambda b, f: (b, f)),   # x tile
        ],
        out_specs=pl.BlockSpec((bs_tile, f_tile), lambda b, f: (b, f)),
        input_output_aliases=({1: 0} if donate else {}),
        compiler_params=pltpu.CompilerParams(
            # Every grid point writes a distinct output block -> both axes
            # parallel (lets megacore shard the batch/feature loop on v7x).
            dimension_semantics=("parallel", "parallel"),
        ),
    )(scale, x2)

    return out.reshape(x.shape)


class DropPath:
    """Mirror of the PyTorch module; drop_prob set at init, training at call.

    Pass a fresh `key` (or distinct `seed`) every call in a training loop;
    the defaults are deterministic.
    """

    def __init__(self, drop_prob=None):
        self.drop_prob = drop_prob

    def __call__(self, x, training=True, key=None, seed=0):
        p = 0.0 if self.drop_prob is None else self.drop_prob
        if key is None:
            key = jax.random.PRNGKey(seed)
        return drop_path(x, p, training=training, key=key)


def _check_drop_path_output(x, y, keep_prob, rtol=1e-5, atol=1e-5):
    """Each sample must be either all-zero or x / keep_prob."""
    x_np = np.asarray(jnp.asarray(x, jnp.float32))
    y_np = np.asarray(jnp.asarray(y, jnp.float32))
    for b in range(x_np.shape[0]):
        zero_ok = np.allclose(y_np[b], 0.0, atol=atol)
        scaled_ok = np.allclose(y_np[b], x_np[b] / keep_prob, rtol=rtol, atol=atol)
        assert zero_ok or scaled_ok, f"sample {b}: not a valid drop-path output"


if __name__ == "__main__":
    key = jax.random.PRNGKey(0)
    module = DropPath(drop_prob=0.2)

    # 1) Typical NCHW activation (feature size a multiple of 128).
    x = jax.random.normal(key, (2, 4, 16, 16), dtype=jnp.float32)
    y = jax.block_until_ready(module(x, training=True, key=jax.random.PRNGKey(1234)))
    _check_drop_path_output(x, y, keep_prob=0.8)

    # 2) Eval mode is the identity.
    y_eval = jax.block_until_ready(module(x, training=False))
    assert np.allclose(np.asarray(y_eval), np.asarray(x)), "eval mode must be identity"

    # 3) Feature size not a multiple of 128: ragged lanes handled by Pallas
    #    edge masking -- no jnp.pad / slice HBM passes.
    x2 = jax.random.normal(jax.random.PRNGKey(1), (2, 3, 7, 5), dtype=jnp.float32)
    y2 = jax.block_until_ready(module(x2, training=True, key=jax.random.PRNGKey(7)))
    _check_drop_path_output(x2, y2, keep_prob=0.8)

    # 4) bf16 input, batch > 2 (batch-blocked single tile; f32 compute in-kernel).
    x3 = jax.random.normal(jax.random.PRNGKey(2), (16, 8, 8, 8), dtype=jnp.bfloat16)
    y3 = jax.block_until_ready(module(x3, training=True, key=jax.random.PRNGKey(3)))
    _check_drop_path_output(x3, y3, keep_prob=0.8, rtol=2e-2, atol=2e-2)

    # 5) Force multi-step grids with a tiny tile budget to exercise the
    #    multiple-of-8 batch tiles and ragged batch / lane edge paths.
    x4 = jax.random.normal(jax.random.PRNGKey(4), (10, 4, 32, 32), dtype=jnp.float32)
    y4 = jax.block_until_ready(
        drop_path(x4, 0.2, training=True, key=jax.random.PRNGKey(5),
                  tile_bytes=64 << 10))
    _check_drop_path_output(x4, y4, keep_prob=0.8)

    x5 = jax.random.normal(jax.random.PRNGKey(6), (9, 5, 7, 11), dtype=jnp.float32)
    y5 = jax.block_until_ready(
        drop_path(x5, 0.2, training=True, key=jax.random.PRNGKey(8),
                  tile_bytes=4 << 10))
    _check_drop_path_output(x5, y5, keep_prob=0.8)

    print("KERNEL_OK")
</pallas_src>

<mosaic_0001>
module attributes {stable_mosaic.version = 11 : i64} {
  func.func @_drop_path_kernel(%arg0: i32, %arg1: i32, %arg2: memref<2x1xf32, #tpu.memory_space<vmem>>, %arg3: memref<2x1024xf32, #tpu.memory_space<vmem>>, %arg4: memref<2x1024xf32, #tpu.memory_space<vmem>>) attributes {dimension_semantics = [#tpu.dimension_semantics<parallel>, #tpu.dimension_semantics<parallel>], iteration_bounds = array<i64: 1, 1>, scalar_prefetch = 0 : i64, scratch_operands = 0 : i64, tpu.core_type = #tpu.core_type<tc>, window_params = [{transform_indices = @transform_0, window_bounds = array<i64: 2, 1>}, {transform_indices = @transform_1, window_bounds = array<i64: 2, 1024>}, {transform_indices = @transform_2, window_bounds = array<i64: 2, 1024>}]} {
    %c0 = arith.constant 0 : index
    %c0_0 = arith.constant 0 : index
    %0 = vector.load %arg3[%c0, %c0_0] : memref<2x1024xf32, #tpu.memory_space<vmem>>, vector<2x1024xf32>
    %c0_1 = arith.constant 0 : index
    %c0_2 = arith.constant 0 : index
    %1 = vector.load %arg2[%c0_1, %c0_2] : memref<2x1xf32, #tpu.memory_space<vmem>>, vector<2x1xf32>
    %2 = vector.broadcast %1 : vector<2x1xf32> to vector<2x1024xf32>
    %3 = arith.mulf %0, %2 : vector<2x1024xf32>
    %c0_3 = arith.constant 0 : index
    %c0_4 = arith.constant 0 : index
    %4 = vector.load %arg4[%c0_3, %c0_4] : memref<2x1024xf32, #tpu.memory_space<vmem>>, vector<2x1024xf32>
    tpu.vector_store %arg4[%c0_3, %c0_4], %3 {strides = array<i32>} : memref<2x1024xf32, #tpu.memory_space<vmem>>, vector<2x1024xf32>,
    return
  }
  func.func @transform_0(%arg0: i32, %arg1: i32) -> (i32, i32) {
    %c0_i32 = arith.constant 0 : i32
    %c0_i32_0 = arith.constant 0 : i32
    return %arg0, %c0_i32 : i32, i32
  }
  func.func @transform_1(%arg0: i32, %arg1: i32) -> (i32, i32) {
    %c0_i32 = arith.constant 0 : i32
    return %arg0, %arg1 : i32, i32
  }
  func.func @transform_2(%arg0: i32, %arg1: i32) -> (i32, i32) {
    %c0_i32 = arith.constant 0 : i32
    return %arg0, %arg1 : i32, i32
  }
}

</mosaic_0001>

<bundles_post_ra>
// kernel: tpu_custom_call.1
= control target key start
LH: loop header
LB: loop body
LE: loop exit
PB: predicated region body
PF: predicated region fallthrough
CT: control target
= control target key end

     0   :  { %7 = vsyncpa [#allocation3], 0  ;;  %s135_s0 = inlined_call_operand.vmem [shape: f32[2,1], index: 0, kind: input, shape index: {}]   ;;  %s136_s1 = inlined_call_operand.hbm [shape: f32[2,1024], index: 1, kind: input, shape index: {}]   ;;  %s137_s2 = inlined_call_operand.hbm [shape: f32[2,1024], index: 2, kind: output, shape index: {}]  }
   0x1   :  { %8 = vsyncpa [#allocation4], 0  ;;  %s107_s9 = smov [#allocation2]  }
   0x2   :  { %s17_s10 = sshll.u32 %s107_s9, 4  ;;  %s18_s10 = int_to_ptr.vmem [resolvable:$true] %s17_s10 }
   0x3   :  { %s71_s11 = scalar_lea.vmem %s18_s10, 256  ;;  %p76_p1 = scmp.lt.s32.totalorder %s18_s10, %s18_s10 }
   0x4   :  { %p72_p0 = scmp.ne.s32.totalorder %s18_s10, %s71_s11  ;;  %p77_p2 = scmp.lt.s32.totalorder %s71_s11, %s71_s11 }
   0x6   :  { %p78_p3 = por %p77_p2, %p76_p1 }
   0x8   :  { %p79_p4 = pnand %p78_p3, %p72_p0 }
   0xa   :  { %82 = shalt.err (!%p79_p4)
}
   0xb   :  { %20 = dma.hbm_to_vmem [thread:$0]  %s136_s1, 256, %s18_s10, [#allocation3]  }
   0xc   :  { %103 = dma.done.wait [#allocation3], 256  }
   0xd   :  { %104 = vsyncadd [#allocation3], 4294967040  ;;  %v108_v0 = vmov 0   ;;  %v26_v1 = vld [vmem:[%s135_s0] sm:$0x3]  ;;  %v34_v4 = vlaneseq  ;;  %v25_v10 = vld [vmem:[#allocation2 + $0x8] sm:$0xff] }
   0xe   :  { %62 = vset.pattern.permute.xlu0 %v108_v0  ;;  %v109_v2 = vmov 269488144   ;;  %v24_v9 = vld [vmem:[#allocation2] sm:$0xff]  ;;  %s110_s16 = smov [#allocation5]  }
   0xf   :  { %29 = vperm.xlu0 %62, %v26_v1   ;;  %v32_v3 = vunpack.c.l.s4 %v109_v2  ;;  %v35_v6 = vshrl.u32 %v34_v4, 7  ;;  %s49_s1 = sshll.u32 %s110_s16, 4  ;;  %s50_s1 = int_to_ptr.vmem [resolvable:$true] %s49_s1 }
  0x10   :  { %s83_s17 = scalar_lea.vmem %s50_s1, 256  ;;  %p88_p6 = scmp.lt.s32.totalorder %s50_s1, %s50_s1 }
  0x11   :  { %v33_v5 = vunpack.c.0.s8 %v32_v3  ;;  %p84_p5 = scmp.ne.s32.totalorder %s50_s1, %s83_s17  ;;  %p89_p7 = scmp.lt.s32.totalorder %s83_s17, %s83_s17 }
  0x13   :  { %v36_v7 = vsub.s32 %v33_v5, %v35_v6  ;;  %p90_p8 = por %p89_p7, %p88_p6 }
  0x15   :  { %p91_p9 = pnand %p90_p8, %p84_p5 }
  0x8a   :  { %v30_v8 = vpop.permute.xlu0 %29 }
  0x8b   :  { %v37_v11 = vrot.slane %v30_v8, %v36_v7 }
  0x8d   :  { %v39_v12 = vmul.f32 %v37_v11, %v24_v9  ;;  %v40_v13 = vmul.f32 %v37_v11, %v25_v10 }
  0x8f   :  { %41 = vst [vmem:[#allocation5] sm:$0xff] %v39_v12  ;;  %42 = vst [vmem:[#allocation5 + $0x8] sm:$0xff] %v40_v13 }
  0x90   :  { %94 = shalt.err (!%p91_p9)
}
  0x91   :  { %52 = dma.vmem_to_hbm [thread:$0]  %s50_s1, 256, %s137_s2, [#allocation4]  }
  0x92   :  { %105 = dma.done.wait [#allocation4], 256  }
  0x93   :  { %106 = vsyncadd [#allocation4], 4294967040 }
  0x94   :  { %56 = vsyncpa [#allocation3], 1 }
  0x95   :  { %57 = vsyncpa [#allocation4], 1 }

</bundles_post_ra>
